<compile_context>
chip_gen: v7x
topology: tpu7x:2x2x1
jax: 0.10.0
libtpu: 0.0.40
codegen_flags: <defaults>
</compile_context>

<pallas_src>
import functools

import jax
import jax.numpy as jnp
from jax import lax
from jax.experimental import pallas as pl
from jax.experimental.pallas import tpu as pltpu


def _tta_cont_kernel(s_ref, out_ref, *, k, inv_temperature):
    # sigmoid(S / T): fold 1/T into a constant multiply (VPU); exp lands on EUP.
    x = s_ref[...].astype(jnp.float32)
    x = 1.0 / (1.0 + jnp.exp(x * jnp.float32(-inv_temperature)))

    # Row sum; normalization deferred until after the top-k loop.
    rowsum = jnp.sum(x, axis=-1, keepdims=True)

    bm, n = x.shape
    col = lax.broadcasted_iota(jnp.int32, (bm, n), 1)  # hoisted out of the loop

    # Sum of k largest per row: k rounds of (row-max, mask first argmax).
    # TODO(synk): full descending sort has no clean Pallas/Mosaic lowering;
    # only the top-k *sum* is needed, so iterative max is exact-equivalent.
    # Exact tie handling (evict only the first tied column each round) keeps
    # parity with the reference when sigmoid saturates to equal values.
    def body(_, carry):
        work, topk = carry
        m = jnp.max(work, axis=-1, keepdims=True)
        topk = topk + m
        is_max = work == m
        first_idx = jnp.min(jnp.where(is_max, col, n), axis=-1, keepdims=True)
        work = jnp.where(col == first_idx, -jnp.inf, work)
        return work, topk

    init = (x, jnp.zeros((bm, 1), jnp.float32))
    _, topk_x = lax.fori_loop(0, k, body, init, unroll=True)

    # Apply the deferred per-row normalization once on the (bm, 1) vector.
    sum_top_k = topk_x / rowsum

    # Per-row contribution; the -mean over the batch happens outside the
    # kernel so the grid axis stays fully parallel.
    out_ref[...] = sum_top_k * jnp.log(sum_top_k + jnp.float32(1e-10))


def _pick_block_b(B, N, itemsize, vmem_block_budget=8 << 20):
    """Largest batch tile: full B if it fits the per-block budget, otherwise the
    biggest multiple-of-8 divisor of B whose (block_b, N) slab stays within it."""
    max_rows = max(8, vmem_block_budget // max(1, N * itemsize))
    if B <= max_rows:
        return B
    bb = min((max_rows // 8) * 8, (B // 8) * 8)
    bb = max(bb, 8)
    while bb > 8 and B % bb != 0:
        bb -= 8
    return bb


def tta_cont_loss(S, *, k=10, temperature=2.5, block_b=None):
    B, N = S.shape
    assert k <= N, "k must not exceed the number of similarity targets N"
    if block_b is None:
        block_b = _pick_block_b(B, N, jnp.dtype(S.dtype).itemsize)
    assert B % block_b == 0, "batch must be divisible by block_b"
    assert block_b == B or block_b % 8 == 0, "block_b must be B or a multiple of 8"

    kernel = functools.partial(
        _tta_cont_kernel, k=k, inv_temperature=1.0 / float(temperature)
    )
    contrib = pl.pallas_call(
        kernel,
        out_shape=jax.ShapeDtypeStruct((B, 1), jnp.float32),
        grid_spec=pltpu.PrefetchScalarGridSpec(
            num_scalar_prefetch=0,
            grid=(B // block_b,),
            in_specs=[pl.BlockSpec((block_b, N), lambda i: (i, 0))],
            out_specs=pl.BlockSpec((block_b, 1), lambda i: (i, 0)),
        ),
        compiler_params=pltpu.CompilerParams(
            dimension_semantics=("parallel",),   # independent row blocks
            vmem_limit_bytes=48 << 20,           # safe on v7x (64 MiB physical)
        ),
    )(S)
    return -jnp.mean(contrib)


def _reference_loss(S, k=10, temperature=2.5):
    # Mirrors the PyTorch module exactly (custom sigmoid, ascending sort).
    x = 1.0 / (1.0 + jnp.exp(-S / temperature))
    p = x / jnp.sum(x, axis=1, keepdims=True)
    p_sorted = jnp.sort(p, axis=1)
    sum_top_k = jnp.sum(p_sorted[:, -k:], axis=1)
    return -jnp.mean(sum_top_k * jnp.log(sum_top_k + 1e-10))


if __name__ == "__main__":
    # Module has no learnable parameters; k and temperature are fixed constants.
    key = jax.random.PRNGKey(0)
    B, N = 16, 128                          # small shapes consistent with forward
    S = 2.0 * jax.random.normal(key, (B, N), dtype=jnp.float32)

    loss = tta_cont_loss(S, k=10, temperature=2.5)
    loss = jax.block_until_ready(loss)

    ref = _reference_loss(S, k=10, temperature=2.5)
    assert jnp.allclose(loss, ref, rtol=1e-5, atol=1e-6), (loss, ref)
    print("KERNEL_OK")
</pallas_src>

<mosaic_0001>
module attributes {stable_mosaic.version = 11 : i64} {
  func.func @_tta_cont_kernel(%arg0: i32, %arg1: memref<16x128xf32, #tpu.memory_space<vmem>>, %arg2: memref<16x1xf32, #tpu.memory_space<vmem>>) attributes {dimension_semantics = [#tpu.dimension_semantics<parallel>], iteration_bounds = array<i64: 1>, scalar_prefetch = 0 : i64, scratch_operands = 0 : i64, tpu.core_type = #tpu.core_type<tc>, window_params = [{transform_indices = @transform_0, window_bounds = array<i64: 16, 128>}, {transform_indices = @transform_1, window_bounds = array<i64: 16, 1>}]} {
    %c0 = arith.constant 0 : index
    %c0_0 = arith.constant 0 : index
    %0 = vector.load %arg1[%c0, %c0_0] : memref<16x128xf32, #tpu.memory_space<vmem>>, vector<16x128xf32>
    %cst = arith.constant -4.000000e-01 : f32
    %1 = vector.broadcast %cst : f32 to vector<16x128xf32>
    %2 = arith.mulf %0, %1 : vector<16x128xf32>
    %3 = math.exp %2 : vector<16x128xf32>
    %cst_1 = arith.constant 1.000000e+00 : f32
    %4 = vector.broadcast %cst_1 : f32 to vector<16x128xf32>
    %5 = arith.addf %4, %3 : vector<16x128xf32>
    %cst_2 = arith.constant 1.000000e+00 : f32
    %6 = vector.broadcast %cst_2 : f32 to vector<16x128xf32>
    %7 = arith.divf %6, %5 : vector<16x128xf32>
    %cst_3 = arith.constant dense<0.000000e+00> : vector<16xf32>
    %8 = vector.multi_reduction <add>, %7, %cst_3 [1] : vector<16x128xf32> to vector<16xf32>
    %9 = vector.shape_cast %8 : vector<16xf32> to vector<16x1xf32>
    %10 = tpu.iota {dimensions = array<i32: 1>} : vector<16x128xi32>
    %cst_4 = arith.constant 0.000000e+00 : f32
    %11 = vector.broadcast %cst_4 : f32 to vector<16x1xf32>
    %c0_i32 = arith.constant 0 : i32
    %cst_5 = arith.constant dense<0xFF800000> : vector<16xf32>
    %12 = vector.multi_reduction <maximumf>, %7, %cst_5 [1] : vector<16x128xf32> to vector<16xf32>
    %13 = vector.shape_cast %12 : vector<16xf32> to vector<16x1xf32>
    %14 = arith.addf %11, %13 : vector<16x1xf32>
    %15 = vector.broadcast %13 : vector<16x1xf32> to vector<16x128xf32>
    %16 = arith.cmpf oeq, %7, %15 : vector<16x128xf32>
    %c128_i32 = arith.constant 128 : i32
    %17 = vector.broadcast %c128_i32 : i32 to vector<16x128xi32>
    %18 = arith.select %16, %10, %17 : vector<16x128xi1>, vector<16x128xi32>
    %cst_6 = arith.constant dense<2147483647> : vector<16xi32>
    %19 = vector.multi_reduction <minsi>, %18, %cst_6 [1] : vector<16x128xi32> to vector<16xi32>
    %20 = vector.shape_cast %19 : vector<16xi32> to vector<16x1xi32>
    %21 = vector.broadcast %20 : vector<16x1xi32> to vector<16x128xi32>
    %22 = arith.cmpi eq, %10, %21 : vector<16x128xi32>
    %cst_7 = arith.constant 0xFF800000 : f32
    %23 = vector.broadcast %cst_7 : f32 to vector<16x128xf32>
    %24 = arith.select %22, %23, %7 : vector<16x128xi1>, vector<16x128xf32>
    %c1_i32 = arith.constant 1 : i32
    %cst_8 = arith.constant dense<0xFF800000> : vector<16xf32>
    %25 = vector.multi_reduction <maximumf>, %24, %cst_8 [1] : vector<16x128xf32> to vector<16xf32>
    %26 = vector.shape_cast %25 : vector<16xf32> to vector<16x1xf32>
    %27 = arith.addf %14, %26 : vector<16x1xf32>
    %28 = vector.broadcast %26 : vector<16x1xf32> to vector<16x128xf32>
    %29 = arith.cmpf oeq, %24, %28 : vector<16x128xf32>
    %c128_i32_9 = arith.constant 128 : i32
    %30 = vector.broadcast %c128_i32_9 : i32 to vector<16x128xi32>
    %31 = arith.select %29, %10, %30 : vector<16x128xi1>, vector<16x128xi32>
    %cst_10 = arith.constant dense<2147483647> : vector<16xi32>
    %32 = vector.multi_reduction <minsi>, %31, %cst_10 [1] : vector<16x128xi32> to vector<16xi32>
    %33 = vector.shape_cast %32 : vector<16xi32> to vector<16x1xi32>
    %34 = vector.broadcast %33 : vector<16x1xi32> to vector<16x128xi32>
    %35 = arith.cmpi eq, %10, %34 : vector<16x128xi32>
    %cst_11 = arith.constant 0xFF800000 : f32
    %36 = vector.broadcast %cst_11 : f32 to vector<16x128xf32>
    %37 = arith.select %35, %36, %24 : vector<16x128xi1>, vector<16x128xf32>
    %c2_i32 = arith.constant 2 : i32
    %cst_12 = arith.constant dense<0xFF800000> : vector<16xf32>
    %38 = vector.multi_reduction <maximumf>, %37, %cst_12 [1] : vector<16x128xf32> to vector<16xf32>
    %39 = vector.shape_cast %38 : vector<16xf32> to vector<16x1xf32>
    %40 = arith.addf %27, %39 : vector<16x1xf32>
    %41 = vector.broadcast %39 : vector<16x1xf32> to vector<16x128xf32>
    %42 = arith.cmpf oeq, %37, %41 : vector<16x128xf32>
    %c128_i32_13 = arith.constant 128 : i32
    %43 = vector.broadcast %c128_i32_13 : i32 to vector<16x128xi32>
    %44 = arith.select %42, %10, %43 : vector<16x128xi1>, vector<16x128xi32>
    %cst_14 = arith.constant dense<2147483647> : vector<16xi32>
    %45 = vector.multi_reduction <minsi>, %44, %cst_14 [1] : vector<16x128xi32> to vector<16xi32>
    %46 = vector.shape_cast %45 : vector<16xi32> to vector<16x1xi32>
    %47 = vector.broadcast %46 : vector<16x1xi32> to vector<16x128xi32>
    %48 = arith.cmpi eq, %10, %47 : vector<16x128xi32>
    %cst_15 = arith.constant 0xFF800000 : f32
    %49 = vector.broadcast %cst_15 : f32 to vector<16x128xf32>
    %50 = arith.select %48, %49, %37 : vector<16x128xi1>, vector<16x128xf32>
    %c3_i32 = arith.constant 3 : i32
    %cst_16 = arith.constant dense<0xFF800000> : vector<16xf32>
    %51 = vector.multi_reduction <maximumf>, %50, %cst_16 [1] : vector<16x128xf32> to vector<16xf32>
    %52 = vector.shape_cast %51 : vector<16xf32> to vector<16x1xf32>
    %53 = arith.addf %40, %52 : vector<16x1xf32>
    %54 = vector.broadcast %52 : vector<16x1xf32> to vector<16x128xf32>
    %55 = arith.cmpf oeq, %50, %54 : vector<16x128xf32>
    %c128_i32_17 = arith.constant 128 : i32
    %56 = vector.broadcast %c128_i32_17 : i32 to vector<16x128xi32>
    %57 = arith.select %55, %10, %56 : vector<16x128xi1>, vector<16x128xi32>
    %cst_18 = arith.constant dense<2147483647> : vector<16xi32>
    %58 = vector.multi_reduction <minsi>, %57, %cst_18 [1] : vector<16x128xi32> to vector<16xi32>
    %59 = vector.shape_cast %58 : vector<16xi32> to vector<16x1xi32>
    %60 = vector.broadcast %59 : vector<16x1xi32> to vector<16x128xi32>
    %61 = arith.cmpi eq, %10, %60 : vector<16x128xi32>
    %cst_19 = arith.constant 0xFF800000 : f32
    %62 = vector.broadcast %cst_19 : f32 to vector<16x128xf32>
    %63 = arith.select %61, %62, %50 : vector<16x128xi1>, vector<16x128xf32>
    %c4_i32 = arith.constant 4 : i32
    %cst_20 = arith.constant dense<0xFF800000> : vector<16xf32>
    %64 = vector.multi_reduction <maximumf>, %63, %cst_20 [1] : vector<16x128xf32> to vector<16xf32>
    %65 = vector.shape_cast %64 : vector<16xf32> to vector<16x1xf32>
    %66 = arith.addf %53, %65 : vector<16x1xf32>
    %67 = vector.broadcast %65 : vector<16x1xf32> to vector<16x128xf32>
    %68 = arith.cmpf oeq, %63, %67 : vector<16x128xf32>
    %c128_i32_21 = arith.constant 128 : i32
    %69 = vector.broadcast %c128_i32_21 : i32 to vector<16x128xi32>
    %70 = arith.select %68, %10, %69 : vector<16x128xi1>, vector<16x128xi32>
    %cst_22 = arith.constant dense<2147483647> : vector<16xi32>
    %71 = vector.multi_reduction <minsi>, %70, %cst_22 [1] : vector<16x128xi32> to vector<16xi32>
    %72 = vector.shape_cast %71 : vector<16xi32> to vector<16x1xi32>
    %73 = vector.broadcast %72 : vector<16x1xi32> to vector<16x128xi32>
    %74 = arith.cmpi eq, %10, %73 : vector<16x128xi32>
    %cst_23 = arith.constant 0xFF800000 : f32
    %75 = vector.broadcast %cst_23 : f32 to vector<16x128xf32>
    %76 = arith.select %74, %75, %63 : vector<16x128xi1>, vector<16x128xf32>
    %c5_i32 = arith.constant 5 : i32
    %cst_24 = arith.constant dense<0xFF800000> : vector<16xf32>
    %77 = vector.multi_reduction <maximumf>, %76, %cst_24 [1] : vector<16x128xf32> to vector<16xf32>
    %78 = vector.shape_cast %77 : vector<16xf32> to vector<16x1xf32>
    %79 = arith.addf %66, %78 : vector<16x1xf32>
    %80 = vector.broadcast %78 : vector<16x1xf32> to vector<16x128xf32>
    %81 = arith.cmpf oeq, %76, %80 : vector<16x128xf32>
    %c128_i32_25 = arith.constant 128 : i32
    %82 = vector.broadcast %c128_i32_25 : i32 to vector<16x128xi32>
    %83 = arith.select %81, %10, %82 : vector<16x128xi1>, vector<16x128xi32>
    %cst_26 = arith.constant dense<2147483647> : vector<16xi32>
    %84 = vector.multi_reduction <minsi>, %83, %cst_26 [1] : vector<16x128xi32> to vector<16xi32>
    %85 = vector.shape_cast %84 : vector<16xi32> to vector<16x1xi32>
    %86 = vector.broadcast %85 : vector<16x1xi32> to vector<16x128xi32>
    %87 = arith.cmpi eq, %10, %86 : vector<16x128xi32>
    %cst_27 = arith.constant 0xFF800000 : f32
    %88 = vector.broadcast %cst_27 : f32 to vector<16x128xf32>
    %89 = arith.select %87, %88, %76 : vector<16x128xi1>, vector<16x128xf32>
    %c6_i32 = arith.constant 6 : i32
    %cst_28 = arith.constant dense<0xFF800000> : vector<16xf32>
    %90 = vector.multi_reduction <maximumf>, %89, %cst_28 [1] : vector<16x128xf32> to vector<16xf32>
    %91 = vector.shape_cast %90 : vector<16xf32> to vector<16x1xf32>
    %92 = arith.addf %79, %91 : vector<16x1xf32>
    %93 = vector.broadcast %91 : vector<16x1xf32> to vector<16x128xf32>
    %94 = arith.cmpf oeq, %89, %93 : vector<16x128xf32>
    %c128_i32_29 = arith.constant 128 : i32
    %95 = vector.broadcast %c128_i32_29 : i32 to vector<16x128xi32>
    %96 = arith.select %94, %10, %95 : vector<16x128xi1>, vector<16x128xi32>
    %cst_30 = arith.constant dense<2147483647> : vector<16xi32>
    %97 = vector.multi_reduction <minsi>, %96, %cst_30 [1] : vector<16x128xi32> to vector<16xi32>
    %98 = vector.shape_cast %97 : vector<16xi32> to vector<16x1xi32>
    %99 = vector.broadcast %98 : vector<16x1xi32> to vector<16x128xi32>
    %100 = arith.cmpi eq, %10, %99 : vector<16x128xi32>
    %cst_31 = arith.constant 0xFF800000 : f32
    %101 = vector.broadcast %cst_31 : f32 to vector<16x128xf32>
    %102 = arith.select %100, %101, %89 : vector<16x128xi1>, vector<16x128xf32>
    %c7_i32 = arith.constant 7 : i32
    %cst_32 = arith.constant dense<0xFF800000> : vector<16xf32>
    %103 = vector.multi_reduction <maximumf>, %102, %cst_32 [1] : vector<16x128xf32> to vector<16xf32>
    %104 = vector.shape_cast %103 : vector<16xf32> to vector<16x1xf32>
    %105 = arith.addf %92, %104 : vector<16x1xf32>
    %106 = vector.broadcast %104 : vector<16x1xf32> to vector<16x128xf32>
    %107 = arith.cmpf oeq, %102, %106 : vector<16x128xf32>
    %c128_i32_33 = arith.constant 128 : i32
    %108 = vector.broadcast %c128_i32_33 : i32 to vector<16x128xi32>
    %109 = arith.select %107, %10, %108 : vector<16x128xi1>, vector<16x128xi32>
    %cst_34 = arith.constant dense<2147483647> : vector<16xi32>
    %110 = vector.multi_reduction <minsi>, %109, %cst_34 [1] : vector<16x128xi32> to vector<16xi32>
    %111 = vector.shape_cast %110 : vector<16xi32> to vector<16x1xi32>
    %112 = vector.broadcast %111 : vector<16x1xi32> to vector<16x128xi32>
    %113 = arith.cmpi eq, %10, %112 : vector<16x128xi32>
    %cst_35 = arith.constant 0xFF800000 : f32
    %114 = vector.broadcast %cst_35 : f32 to vector<16x128xf32>
    %115 = arith.select %113, %114, %102 : vector<16x128xi1>, vector<16x128xf32>
    %c8_i32 = arith.constant 8 : i32
    %cst_36 = arith.constant dense<0xFF800000> : vector<16xf32>
    %116 = vector.multi_reduction <maximumf>, %115, %cst_36 [1] : vector<16x128xf32> to vector<16xf32>
    %117 = vector.shape_cast %116 : vector<16xf32> to vector<16x1xf32>
    %118 = arith.addf %105, %117 : vector<16x1xf32>
    %119 = vector.broadcast %117 : vector<16x1xf32> to vector<16x128xf32>
    %120 = arith.cmpf oeq, %115, %119 : vector<16x128xf32>
    %c128_i32_37 = arith.constant 128 : i32
    %121 = vector.broadcast %c128_i32_37 : i32 to vector<16x128xi32>
    %122 = arith.select %120, %10, %121 : vector<16x128xi1>, vector<16x128xi32>
    %cst_38 = arith.constant dense<2147483647> : vector<16xi32>
    %123 = vector.multi_reduction <minsi>, %122, %cst_38 [1] : vector<16x128xi32> to vector<16xi32>
    %124 = vector.shape_cast %123 : vector<16xi32> to vector<16x1xi32>
    %125 = vector.broadcast %124 : vector<16x1xi32> to vector<16x128xi32>
    %126 = arith.cmpi eq, %10, %125 : vector<16x128xi32>
    %cst_39 = arith.constant 0xFF800000 : f32
    %127 = vector.broadcast %cst_39 : f32 to vector<16x128xf32>
    %128 = arith.select %126, %127, %115 : vector<16x128xi1>, vector<16x128xf32>
    %c9_i32 = arith.constant 9 : i32
    %cst_40 = arith.constant dense<0xFF800000> : vector<16xf32>
    %129 = vector.multi_reduction <maximumf>, %128, %cst_40 [1] : vector<16x128xf32> to vector<16xf32>
    %130 = vector.shape_cast %129 : vector<16xf32> to vector<16x1xf32>
    %131 = arith.addf %118, %130 : vector<16x1xf32>
    %132 = vector.broadcast %130 : vector<16x1xf32> to vector<16x128xf32>
    %133 = arith.cmpf oeq, %128, %132 : vector<16x128xf32>
    %c128_i32_41 = arith.constant 128 : i32
    %134 = vector.broadcast %c128_i32_41 : i32 to vector<16x128xi32>
    %135 = arith.select %133, %10, %134 : vector<16x128xi1>, vector<16x128xi32>
    %cst_42 = arith.constant dense<2147483647> : vector<16xi32>
    %136 = vector.multi_reduction <minsi>, %135, %cst_42 [1] : vector<16x128xi32> to vector<16xi32>
    %137 = vector.shape_cast %136 : vector<16xi32> to vector<16x1xi32>
    %138 = vector.broadcast %137 : vector<16x1xi32> to vector<16x128xi32>
    %139 = arith.cmpi eq, %10, %138 : vector<16x128xi32>
    %cst_43 = arith.constant 0xFF800000 : f32
    %140 = vector.broadcast %cst_43 : f32 to vector<16x128xf32>
    %141 = arith.select %139, %140, %128 : vector<16x128xi1>, vector<16x128xf32>
    %142 = arith.divf %131, %9 : vector<16x1xf32>
    %cst_44 = arith.constant 1.000000e-10 : f32
    %143 = vector.broadcast %cst_44 : f32 to vector<16x1xf32>
    %144 = arith.addf %142, %143 : vector<16x1xf32>
    %145 = math.log %144 : vector<16x1xf32>
    %146 = arith.mulf %142, %145 : vector<16x1xf32>
    %c0_45 = arith.constant 0 : index
    %c0_46 = arith.constant 0 : index
    %147 = vector.load %arg2[%c0_45, %c0_46] : memref<16x1xf32, #tpu.memory_space<vmem>>, vector<16x1xf32>
    tpu.vector_store %arg2[%c0_45, %c0_46], %146 {strides = array<i32>} : memref<16x1xf32, #tpu.memory_space<vmem>>, vector<16x1xf32>,
    return
  }
  func.func @transform_0(%arg0: i32) -> (i32, i32) {
    %c0_i32 = arith.constant 0 : i32
    %c0_i32_0 = arith.constant 0 : i32
    return %arg0, %c0_i32 : i32, i32
  }
  func.func @transform_1(%arg0: i32) -> (i32, i32) {
    %c0_i32 = arith.constant 0 : i32
    %c0_i32_0 = arith.constant 0 : i32
    return %arg0, %c0_i32 : i32, i32
  }
}

</mosaic_0001>

<bundles_post_ra>
// kernel: tpu_custom_call.1
= control target key start
LH: loop header
LB: loop body
LE: loop exit
PB: predicated region body
PF: predicated region fallthrough
CT: control target
= control target key end

     0   :  { %6 = vsyncpa [#allocation3], 0  ;;  %s489_s6 = smov [#allocation2]   ;;  %s634_s0 = inlined_call_operand.hbm [shape: f32[16,128], index: 0, kind: input, shape index: {}]   ;;  %s635_s1 = inlined_call_operand.vmem [shape: f32[16,1], index: 1, kind: output, shape index: {}]  }
   0x1   :  { %s12_s7 = sshll.u32 %s489_s6, 4  ;;  %s465_s10 = scalar_lea.hbm %s634_s0, 256  ;;  %s13_s7 = int_to_ptr.vmem [resolvable:$true] %s12_s7 }
   0x2   :  { %p466_p0 = scmp.ne.s32.totalorder %s634_s0, %s465_s10  ;;  %p469_p1 = scmp.lt.u32.totalorder %s465_s10, %s634_s0 }
   0x4   :  { %p471_p2 = pnand %p469_p1, %p466_p0 }
   0x6   :  { %474 = shalt.err (!%p471_p2)
}
   0x7   :  { %s475_s15 = scalar_lea.vmem %s13_s7, 256  ;;  %p480_p4 = scmp.lt.s32.totalorder %s13_s7, %s13_s7 }
   0x8   :  { %p476_p3 = scmp.ne.s32.totalorder %s13_s7, %s475_s15  ;;  %p481_p5 = scmp.lt.s32.totalorder %s475_s15, %s475_s15 }
   0xa   :  { %p482_p6 = por %p481_p5, %p480_p4 }
   0xc   :  { %p483_p7 = pnand %p482_p6, %p476_p3 }
   0xe   :  { %486 = shalt.err (!%p483_p7)
}
   0xf   :  { %s490_s16 = smov 128   ;;  %s491_s17 = smov 8  }
  0x10   :  { %18 = dma.hbm_to_vmem [thread:$0]  %s634_s0, 256, %s13_s7, [#allocation3], %s490_s16, %s490_s16, %s491_s17  }
  0x11   :  { %487 = dma.done.wait [#allocation3], 256  }
  0x12   :  { %488 = vsyncadd [#allocation3], 4294967040  ;;  %v22_v0 = vld [vmem:[#allocation2] sm:$0xff]  ;;  %v23_v1 = vld [vmem:[#allocation2 + $0x8] sm:$0xff]  ;;  %v40_v12 = vlaneseq }
  0x13   :  { %v24_v2 = vmul.f32 -0.4, %v22_v0  ;;  %v25_v3 = vmul.f32 -0.4, %v23_v1 }
  0x14   :  { %v520_v13 = vand.u32 127, %v40_v12 }
  0x15   :  { %v26_v4 = vmul.f32 1.442695, %v24_v2  ;;  %v28_v5 = vmul.f32 1.442695, %v25_v3 }
  0x17   :  { %449 = vpow2.f32 %v26_v4 }
  0x18   :  { %451 = vpow2.f32 %v28_v5 }
  0x21   :  { %v450_v6 = vpop.eup %449 }
  0x22   :  { %v452_v7 = vpop.eup %451  ;;  %v30_v8 = vadd.f32 1.0, %v450_v6 }
  0x23   :  { %v31_v9 = vadd.f32 1.0, %v452_v7 }
  0x24   :  { %453 = vrcp.f32 %v30_v8 }
  0x25   :  { %455 = vrcp.f32 %v31_v9 }
  0x2e   :  { %v514_v10 = vpop.eup %453 }
  0x2f   :  { %42 = vmax.xlane.f32.xlu0 %v514_v10  ;;  %v517_v11 = vpop.eup %455 }
  0x33   :  { %44 = vmax.xlane.f32.xlu0 %v517_v11 }
  0xbc   :  { %v522_v14 = vpop.xlane.xlu0 %42 }
  0xbd   :  { %vm48_vm0 = vcmp.eq.f32.partialorder %v514_v10, %v522_v14 }
  0xbe   :  { %v50_v15 = vsel %vm48_vm0, %v520_v13, 128 }
  0xbf   :  { %v53_v16 = vshra.s32 %v50_v15, 16  ;;  %v52_v22 = vand.u32 65535, %v50_v15 }
  0xc0   :  { %v527_v17 = vpop.xlane.xlu0 %44 }
  0xc1   :  { %vm49_vm1 = vcmp.eq.f32.partialorder %v517_v11, %v527_v17  ;;  %v55_v18 = vcvt.s32.f32 %v53_v16  ;;  %v54_v24 = vcvt.s32.f32 %v52_v22 }
  0xc2   :  { %v51_v19 = vsel %vm49_vm1, %v520_v13, 128 }
  0xc3   :  { %56 = vmin.xlane.f32.xlu1 %v55_v18  ;;  %v67_v20 = vshra.s32 %v51_v19, 16  ;;  %v66_v25 = vand.u32 65535, %v51_v19 }
  0xc5   :  { %v69_v21 = vcvt.s32.f32 %v67_v20  ;;  %v68_v28 = vcvt.s32.f32 %v66_v25 }
  0xc7   :  { %70 = vmin.xlane.f32.xlu1 %v69_v21 }
 0x150   :  { %v57_v23 = vpop.xlane.xlu1 %56 }
 0x151   :  { %vm58_vm2 = vcmp.eq.f32.partialorder %v55_v18, %v57_v23  ;;  %v63_v30 = vcvt.f32.s32 %v57_v23 }
 0x152   :  { %v59_v26 = vsel %vm58_vm2, %v54_v24, inf }
 0x153   :  { %60 = vmin.xlane.f32.xlu0 %v59_v26  ;;  %v64_v32 = vshll.u32 %v63_v30, 16 }
 0x154   :  { %v71_v27 = vpop.xlane.xlu1 %70 }
 0x155   :  { %vm72_vm3 = vcmp.eq.f32.partialorder %v69_v21, %v71_v27  ;;  %v77_v33 = vcvt.f32.s32 %v71_v27 }
 0x156   :  { %v73_v29 = vsel %vm72_vm3, %v68_v28, inf }
 0x157   :  { %74 = vmin.xlane.f32.xlu1 %v73_v29  ;;  %v78_v37 = vshll.u32 %v77_v33, 16 }
 0x1e0   :  { %v61_v31 = vpop.xlane.xlu0 %60 }
 0x1e1   :  { %v62_v34 = vcvt.f32.s32 %v61_v31 }
 0x1e3   :  { %v65_v35 = vadd.s32 %v64_v32, %v62_v34 }
 0x1e4   :  { %v75_v36 = vpop.xlane.xlu1 %74 }
 0x1e5   :  { %v76_v38 = vcvt.f32.s32 %v75_v36  ;;  %vm80_vm4 = vcmp.eq.s32.totalorder %v520_v13, %v65_v35 }
 0x1e6   :  { %v82_v39 = vsel %vm80_vm4, -inf, %v514_v10 }
 0x1e7   :  { %v79_v40 = vadd.s32 %v78_v37, %v76_v38  ;;  %84 = vmax.xlane.f32.xlu0 %v82_v39 }
 0x1e9   :  { %vm81_vm5 = vcmp.eq.s32.totalorder %v520_v13, %v79_v40 }
 0x1ea   :  { %v83_v41 = vsel %vm81_vm5, -inf, %v517_v11 }
 0x1eb   :  { %86 = vmax.xlane.f32.xlu1 %v83_v41 }
 0x274   :  { %v536_v42 = vpop.xlane.xlu0 %84 }
 0x275   :  { %vm90_vm6 = vcmp.eq.f32.partialorder %v82_v39, %v536_v42 }
 0x276   :  { %v92_v43 = vsel %vm90_vm6, %v520_v13, 128 }
 0x277   :  { %v95_v44 = vshra.s32 %v92_v43, 16  ;;  %v94_v50 = vand.u32 65535, %v92_v43 }
 0x278   :  { %v540_v45 = vpop.xlane.xlu1 %86 }
 0x279   :  { %vm91_vm7 = vcmp.eq.f32.partialorder %v83_v41, %v540_v45  ;;  %v97_v46 = vcvt.s32.f32 %v95_v44  ;;  %v96_v52 = vcvt.s32.f32 %v94_v50 }
 0x27a   :  { %v93_v47 = vsel %vm91_vm7, %v520_v13, 128 }
 0x27b   :  { %98 = vmin.xlane.f32.xlu0 %v97_v46  ;;  %v109_v48 = vshra.s32 %v93_v47, 16  ;;  %v108_v53 = vand.u32 65535, %v93_v47 }
 0x27d   :  { %v111_v49 = vcvt.s32.f32 %v109_v48  ;;  %v110_v56 = vcvt.s32.f32 %v108_v53 }
 0x27f   :  { %112 = vmin.xlane.f32.xlu1 %v111_v49 }
 0x308   :  { %v99_v51 = vpop.xlane.xlu0 %98 }
 0x309   :  { %vm100_vm8 = vcmp.eq.f32.partialorder %v97_v46, %v99_v51  ;;  %v105_v58 = vcvt.f32.s32 %v99_v51 }
 0x30a   :  { %v101_v54 = vsel %vm100_vm8, %v96_v52, inf }
 0x30b   :  { %102 = vmin.xlane.f32.xlu0 %v101_v54  ;;  %v106_v60 = vshll.u32 %v105_v58, 16 }
 0x30c   :  { %v113_v55 = vpop.xlane.xlu1 %112 }
 0x30d   :  { %vm114_vm9 = vcmp.eq.f32.partialorder %v111_v49, %v113_v55  ;;  %v119_v61 = vcvt.f32.s32 %v113_v55 }
 0x30e   :  { %v115_v57 = vsel %vm114_vm9, %v110_v56, inf }
 0x30f   :  { %116 = vmin.xlane.f32.xlu1 %v115_v57  ;;  %v120_v1 = vshll.u32 %v119_v61, 16 }
 0x398   :  { %v103_v59 = vpop.xlane.xlu0 %102 }
 0x399   :  { %v104_v62 = vcvt.f32.s32 %v103_v59 }
 0x39b   :  { %v107_v63 = vadd.s32 %v106_v60, %v104_v62 }
 0x39c   :  { %v117_v0 = vpop.xlane.xlu1 %116 }
 0x39d   :  { %v118_v2 = vcvt.f32.s32 %v117_v0  ;;  %vm122_vm10 = vcmp.eq.s32.totalorder %v520_v13, %v107_v63 }
 0x39e   :  { %v124_v3 = vsel %vm122_vm10, -inf, %v82_v39 }
 0x39f   :  { %v121_v4 = vadd.s32 %v120_v1, %v118_v2  ;;  %126 = vmax.xlane.f32.xlu0 %v124_v3 }
 0x3a1   :  { %vm123_vm11 = vcmp.eq.s32.totalorder %v520_v13, %v121_v4 }
 0x3a2   :  { %v125_v5 = vsel %vm123_vm11, -inf, %v83_v41 }
 0x3a3   :  { %128 = vmax.xlane.f32.xlu1 %v125_v5 }
 0x42c   :  { %v546_v6 = vpop.xlane.xlu0 %126 }
 0x42d   :  { %vm132_vm12 = vcmp.eq.f32.partialorder %v124_v3, %v546_v6 }
 0x42e   :  { %v134_v7 = vsel %vm132_vm12, %v520_v13, 128 }
 0x42f   :  { %v137_v8 = vshra.s32 %v134_v7, 16  ;;  %v136_v19 = vand.u32 65535, %v134_v7 }
 0x430   :  { %v550_v9 = vpop.xlane.xlu1 %128 }
 0x431   :  { %vm133_vm13 = vcmp.eq.f32.partialorder %v125_v5, %v550_v9  ;;  %v139_v12 = vcvt.s32.f32 %v137_v8  ;;  %v138_v21 = vcvt.s32.f32 %v136_v19 }
 0x432   :  { %v135_v15 = vsel %vm133_vm13, %v520_v13, 128 }
 0x433   :  { %140 = vmin.xlane.f32.xlu0 %v139_v12  ;;  %v151_v16 = vshra.s32 %v135_v15, 16  ;;  %v150_v22 = vand.u32 65535, %v135_v15 }
 0x435   :  { %v153_v18 = vcvt.s32.f32 %v151_v16  ;;  %v152_v25 = vcvt.s32.f32 %v150_v22 }
 0x437   :  { %154 = vmin.xlane.f32.xlu1 %v153_v18 }
 0x4c0   :  { %v141_v20 = vpop.xlane.xlu0 %140 }
 0x4c1   :  { %vm142_vm14 = vcmp.eq.f32.partialorder %v139_v12, %v141_v20  ;;  %v147_v27 = vcvt.f32.s32 %v141_v20 }
 0x4c2   :  { %v143_v23 = vsel %vm142_vm14, %v138_v21, inf }
 0x4c3   :  { %144 = vmin.xlane.f32.xlu0 %v143_v23  ;;  %v148_v29 = vshll.u32 %v147_v27, 16 }
 0x4c4   :  { %v155_v24 = vpop.xlane.xlu1 %154 }
 0x4c5   :  { %vm156_vm15 = vcmp.eq.f32.partialorder %v153_v18, %v155_v24  ;;  %v161_v30 = vcvt.f32.s32 %v155_v24 }
 0x4c6   :  { %v157_v26 = vsel %vm156_vm15, %v152_v25, inf }
 0x4c7   :  { %158 = vmin.xlane.f32.xlu1 %v157_v26  ;;  %v162_v34 = vshll.u32 %v161_v30, 16 }
 0x550   :  { %v145_v28 = vpop.xlane.xlu0 %144 }
 0x551   :  { %v146_v31 = vcvt.f32.s32 %v145_v28 }
 0x553   :  { %v149_v32 = vadd.s32 %v148_v29, %v146_v31 }
 0x554   :  { %v159_v33 = vpop.xlane.xlu1 %158 }
 0x555   :  { %v160_v35 = vcvt.f32.s32 %v159_v33  ;;  %vm164_vm0 = vcmp.eq.s32.totalorder %v520_v13, %v149_v32 }
 0x556   :  { %v166_v36 = vsel %vm164_vm0, -inf, %v124_v3 }
 0x557   :  { %v163_v37 = vadd.s32 %v162_v34, %v160_v35  ;;  %168 = vmax.xlane.f32.xlu0 %v166_v36 }
 0x559   :  { %vm165_vm1 = vcmp.eq.s32.totalorder %v520_v13, %v163_v37 }
 0x55a   :  { %v167_v38 = vsel %vm165_vm1, -inf, %v125_v5 }
 0x55b   :  { %170 = vmax.xlane.f32.xlu1 %v167_v38 }
 0x5e4   :  { %v556_v39 = vpop.xlane.xlu0 %168 }
 0x5e5   :  { %vm174_vm2 = vcmp.eq.f32.partialorder %v166_v36, %v556_v39 }
 0x5e6   :  { %v176_v40 = vsel %vm174_vm2, %v520_v13, 128 }
 0x5e7   :  { %v179_v41 = vshra.s32 %v176_v40, 16  ;;  %v178_v49 = vand.u32 65535, %v176_v40 }
 0x5e8   :  { %v560_v43 = vpop.xlane.xlu1 %170 }
 0x5e9   :  { %vm175_vm3 = vcmp.eq.f32.partialorder %v167_v38, %v560_v43  ;;  %v181_v44 = vcvt.s32.f32 %v179_v41  ;;  %v180_v51 = vcvt.s32.f32 %v178_v49 }
 0x5ea   :  { %v177_v46 = vsel %vm175_vm3, %v520_v13, 128 }
 0x5eb   :  { %182 = vmin.xlane.f32.xlu0 %v181_v44  ;;  %v193_v47 = vshra.s32 %v177_v46, 16  ;;  %v192_v52 = vand.u32 65535, %v177_v46 }
 0x5ed   :  { %v195_v48 = vcvt.s32.f32 %v193_v47  ;;  %v194_v55 = vcvt.s32.f32 %v192_v52 }
 0x5ef   :  { %196 = vmin.xlane.f32.xlu1 %v195_v48 }
 0x678   :  { %v183_v50 = vpop.xlane.xlu0 %182 }
 0x679   :  { %vm184_vm4 = vcmp.eq.f32.partialorder %v181_v44, %v183_v50  ;;  %v189_v57 = vcvt.f32.s32 %v183_v50 }
 0x67a   :  { %v185_v53 = vsel %vm184_vm4, %v180_v51, inf }
 0x67b   :  { %186 = vmin.xlane.f32.xlu0 %v185_v53  ;;  %v190_v59 = vshll.u32 %v189_v57, 16 }
 0x67c   :  { %v197_v54 = vpop.xlane.xlu1 %196 }
 0x67d   :  { %vm198_vm5 = vcmp.eq.f32.partialorder %v195_v48, %v197_v54  ;;  %v203_v60 = vcvt.f32.s32 %v197_v54 }
 0x67e   :  { %v199_v56 = vsel %vm198_vm5, %v194_v55, inf }
 0x67f   :  { %200 = vmin.xlane.f32.xlu1 %v199_v56  ;;  %v204_v0 = vshll.u32 %v203_v60, 16 }
 0x708   :  { %v187_v58 = vpop.xlane.xlu0 %186 }
 0x709   :  { %v188_v61 = vcvt.f32.s32 %v187_v58 }
 0x70b   :  { %v191_v62 = vadd.s32 %v190_v59, %v188_v61 }
 0x70c   :  { %v201_v63 = vpop.xlane.xlu1 %200 }
 0x70d   :  { %v202_v1 = vcvt.f32.s32 %v201_v63  ;;  %vm206_vm6 = vcmp.eq.s32.totalorder %v520_v13, %v191_v62 }
 0x70e   :  { %v208_v2 = vsel %vm206_vm6, -inf, %v166_v36 }
 0x70f   :  { %v205_v3 = vadd.s32 %v204_v0, %v202_v1  ;;  %210 = vmax.xlane.f32.xlu0 %v208_v2 }
 0x711   :  { %vm207_vm7 = vcmp.eq.s32.totalorder %v520_v13, %v205_v3 }
 0x712   :  { %v209_v4 = vsel %vm207_vm7, -inf, %v167_v38 }
 0x713   :  { %212 = vmax.xlane.f32.xlu1 %v209_v4 }
 0x79c   :  { %v566_v5 = vpop.xlane.xlu0 %210 }
 0x79d   :  { %vm216_vm8 = vcmp.eq.f32.partialorder %v208_v2, %v566_v5 }
 0x79e   :  { %v218_v7 = vsel %vm216_vm8, %v520_v13, 128 }
 0x79f   :  { %v221_v8 = vshra.s32 %v218_v7, 16  ;;  %v220_v20 = vand.u32 65535, %v218_v7 }
 0x7a0   :  { %v570_v12 = vpop.xlane.xlu1 %212 }
 0x7a1   :  { %vm217_vm9 = vcmp.eq.f32.partialorder %v209_v4, %v570_v12  ;;  %v223_v15 = vcvt.s32.f32 %v221_v8  ;;  %v222_v22 = vcvt.s32.f32 %v220_v20 }
 0x7a2   :  { %v219_v16 = vsel %vm217_vm9, %v520_v13, 128 }
 0x7a3   :  { %224 = vmin.xlane.f32.xlu0 %v223_v15  ;;  %v235_v18 = vshra.s32 %v219_v16, 16  ;;  %v234_v23 = vand.u32 65535, %v219_v16 }
 0x7a5   :  { %v237_v19 = vcvt.s32.f32 %v235_v18  ;;  %v236_v26 = vcvt.s32.f32 %v234_v23 }
 0x7a7   :  { %238 = vmin.xlane.f32.xlu1 %v237_v19 }
 0x830   :  { %v225_v21 = vpop.xlane.xlu0 %224 }
 0x831   :  { %vm226_vm10 = vcmp.eq.f32.partialorder %v223_v15, %v225_v21  ;;  %v231_v28 = vcvt.f32.s32 %v225_v21 }
 0x832   :  { %v227_v24 = vsel %vm226_vm10, %v222_v22, inf }
 0x833   :  { %228 = vmin.xlane.f32.xlu0 %v227_v24  ;;  %v232_v30 = vshll.u32 %v231_v28, 16 }
 0x834   :  { %v239_v25 = vpop.xlane.xlu1 %238 }
 0x835   :  { %vm240_vm11 = vcmp.eq.f32.partialorder %v237_v19, %v239_v25  ;;  %v245_v31 = vcvt.f32.s32 %v239_v25 }
 0x836   :  { %v241_v27 = vsel %vm240_vm11, %v236_v26, inf }
 0x837   :  { %242 = vmin.xlane.f32.xlu1 %v241_v27  ;;  %v246_v35 = vshll.u32 %v245_v31, 16 }
 0x8c0   :  { %v229_v29 = vpop.xlane.xlu0 %228 }
 0x8c1   :  { %v230_v32 = vcvt.f32.s32 %v229_v29 }
 0x8c3   :  { %v233_v33 = vadd.s32 %v232_v30, %v230_v32 }
 0x8c4   :  { %v243_v34 = vpop.xlane.xlu1 %242 }
 0x8c5   :  { %v244_v36 = vcvt.f32.s32 %v243_v34  ;;  %vm248_vm12 = vcmp.eq.s32.totalorder %v520_v13, %v233_v33 }
 0x8c6   :  { %v250_v37 = vsel %vm248_vm12, -inf, %v208_v2 }
 0x8c7   :  { %v247_v38 = vadd.s32 %v246_v35, %v244_v36  ;;  %252 = vmax.xlane.f32.xlu0 %v250_v37 }
 0x8c9   :  { %vm249_vm13 = vcmp.eq.s32.totalorder %v520_v13, %v247_v38 }
 0x8ca   :  { %v251_v40 = vsel %vm249_vm13, -inf, %v209_v4 }
 0x8cb   :  { %254 = vmax.xlane.f32.xlu1 %v251_v40 }
 0x954   :  { %v576_v41 = vpop.xlane.xlu0 %252 }
 0x955   :  { %vm258_vm14 = vcmp.eq.f32.partialorder %v250_v37, %v576_v41 }
 0x956   :  { %v260_v44 = vsel %vm258_vm14, %v520_v13, 128 }
 0x957   :  { %v263_v46 = vshra.s32 %v260_v44, 16  ;;  %v262_v52 = vand.u32 65535, %v260_v44 }
 0x958   :  { %v580_v47 = vpop.xlane.xlu1 %254 }
 0x959   :  { %vm259_vm15 = vcmp.eq.f32.partialorder %v251_v40, %v580_v47  ;;  %v265_v48 = vcvt.s32.f32 %v263_v46  ;;  %v264_v54 = vcvt.s32.f32 %v262_v52 }
 0x95a   :  { %v261_v49 = vsel %vm259_vm15, %v520_v13, 128 }
 0x95b   :  { %266 = vmin.xlane.f32.xlu0 %v265_v48  ;;  %v277_v50 = vshra.s32 %v261_v49, 16  ;;  %v276_v55 = vand.u32 65535, %v261_v49 }
 0x95d   :  { %v279_v51 = vcvt.s32.f32 %v277_v50  ;;  %v278_v58 = vcvt.s32.f32 %v276_v55 }
 0x95f   :  { %280 = vmin.xlane.f32.xlu1 %v279_v51 }
 0x9e8   :  { %v267_v53 = vpop.xlane.xlu0 %266 }
 0x9e9   :  { %vm268_vm0 = vcmp.eq.f32.partialorder %v265_v48, %v267_v53  ;;  %v273_v60 = vcvt.f32.s32 %v267_v53 }
 0x9ea   :  { %v269_v56 = vsel %vm268_vm0, %v264_v54, inf }
 0x9eb   :  { %270 = vmin.xlane.f32.xlu0 %v269_v56  ;;  %v274_v62 = vshll.u32 %v273_v60, 16 }
 0x9ec   :  { %v281_v57 = vpop.xlane.xlu1 %280 }
 0x9ed   :  { %vm282_vm1 = vcmp.eq.f32.partialorder %v279_v51, %v281_v57  ;;  %v287_v63 = vcvt.f32.s32 %v281_v57 }
 0x9ee   :  { %v283_v59 = vsel %vm282_vm1, %v278_v58, inf }
 0x9ef   :  { %284 = vmin.xlane.f32.xlu1 %v283_v59  ;;  %v288_v3 = vshll.u32 %v287_v63, 16 }
 0xa78   :  { %v271_v61 = vpop.xlane.xlu0 %270 }
 0xa79   :  { %v272_v0 = vcvt.f32.s32 %v271_v61 }
 0xa7b   :  { %v275_v1 = vadd.s32 %v274_v62, %v272_v0 }
 0xa7c   :  { %v285_v2 = vpop.xlane.xlu1 %284 }
 0xa7d   :  { %v286_v4 = vcvt.f32.s32 %v285_v2  ;;  %vm290_vm2 = vcmp.eq.s32.totalorder %v520_v13, %v275_v1 }
 0xa7e   :  { %v292_v7 = vsel %vm290_vm2, -inf, %v250_v37 }
 0xa7f   :  { %v289_v8 = vadd.s32 %v288_v3, %v286_v4  ;;  %294 = vmax.xlane.f32.xlu0 %v292_v7 }
 0xa81   :  { %vm291_vm3 = vcmp.eq.s32.totalorder %v520_v13, %v289_v8 }
 0xa82   :  { %v293_v15 = vsel %vm291_vm3, -inf, %v251_v40 }
 0xa83   :  { %296 = vmax.xlane.f32.xlu1 %v293_v15 }
 0xb0c   :  { %v586_v16 = vpop.xlane.xlu0 %294 }
 0xb0d   :  { %vm300_vm4 = vcmp.eq.f32.partialorder %v292_v7, %v586_v16 }
 0xb0e   :  { %v302_v18 = vsel %vm300_vm4, %v520_v13, 128 }
 0xb0f   :  { %v305_v19 = vshra.s32 %v302_v18, 16  ;;  %v304_v25 = vand.u32 65535, %v302_v18 }
 0xb10   :  { %v590_v20 = vpop.xlane.xlu1 %296 }
 0xb11   :  { %vm301_vm5 = vcmp.eq.f32.partialorder %v293_v15, %v590_v20  ;;  %v307_v21 = vcvt.s32.f32 %v305_v19  ;;  %v306_v27 = vcvt.s32.f32 %v304_v25 }
 0xb12   :  { %v303_v22 = vsel %vm301_vm5, %v520_v13, 128 }
 0xb13   :  { %308 = vmin.xlane.f32.xlu0 %v307_v21  ;;  %v319_v23 = vshra.s32 %v303_v22, 16  ;;  %v318_v28 = vand.u32 65535, %v303_v22 }
 0xb15   :  { %v321_v24 = vcvt.s32.f32 %v319_v23  ;;  %v320_v31 = vcvt.s32.f32 %v318_v28 }
 0xb17   :  { %322 = vmin.xlane.f32.xlu1 %v321_v24 }
 0xba0   :  { %v309_v26 = vpop.xlane.xlu0 %308 }
 0xba1   :  { %vm310_vm6 = vcmp.eq.f32.partialorder %v307_v21, %v309_v26  ;;  %v315_v33 = vcvt.f32.s32 %v309_v26 }
 0xba2   :  { %v311_v29 = vsel %vm310_vm6, %v306_v27, inf  ;;  %vm438_vm6 = vcmask 7168  }
 0xba3   :  { %312 = vmin.xlane.f32.xlu0 %v311_v29  ;;  %v316_v35 = vshll.u32 %v315_v33, 16 }
 0xba4   :  { %v323_v30 = vpop.xlane.xlu1 %322 }
 0xba5   :  { %vm324_vm7 = vcmp.eq.f32.partialorder %v321_v24, %v323_v30  ;;  %v329_v36 = vcvt.f32.s32 %v323_v30 }
 0xba6   :  { %v325_v32 = vsel %vm324_vm7, %v320_v31, inf }
 0xba7   :  { %326 = vmin.xlane.f32.xlu1 %v325_v32  ;;  %v330_v44 = vshll.u32 %v329_v36, 16 }
 0xc30   :  { %v313_v34 = vpop.xlane.xlu0 %312 }
 0xc31   :  { %v314_v37 = vcvt.f32.s32 %v313_v34 }
 0xc33   :  { %v317_v38 = vadd.s32 %v316_v35, %v314_v37 }
 0xc34   :  { %v327_v40 = vpop.xlane.xlu1 %326 }
 0xc35   :  { %v328_v46 = vcvt.f32.s32 %v327_v40  ;;  %vm332_vm8 = vcmp.eq.s32.totalorder %v520_v13, %v317_v38 }
 0xc36   :  { %v334_v48 = vsel %vm332_vm8, -inf, %v292_v7 }
 0xc37   :  { %v331_v49 = vadd.s32 %v330_v44, %v328_v46  ;;  %336 = vmax.xlane.f32.xlu0 %v334_v48 }
 0xc39   :  { %vm333_vm9 = vcmp.eq.s32.totalorder %v520_v13, %v331_v49 }
 0xc3a   :  { %v335_v50 = vsel %vm333_vm9, -inf, %v293_v15 }
 0xc3b   :  { %338 = vmax.xlane.f32.xlu1 %v335_v50 }
 0xcc4   :  { %v596_v51 = vpop.xlane.xlu0 %336 }
 0xcc5   :  { %vm342_vm10 = vcmp.eq.f32.partialorder %v334_v48, %v596_v51 }
 0xcc6   :  { %v344_v52 = vsel %vm342_vm10, %v520_v13, 128 }
 0xcc7   :  { %v347_v53 = vshra.s32 %v344_v52, 16  ;;  %v346_v59 = vand.u32 65535, %v344_v52 }
 0xcc8   :  { %v600_v54 = vpop.xlane.xlu1 %338 }
 0xcc9   :  { %vm343_vm11 = vcmp.eq.f32.partialorder %v335_v50, %v600_v54  ;;  %v349_v55 = vcvt.s32.f32 %v347_v53  ;;  %v348_v61 = vcvt.s32.f32 %v346_v59 }
 0xcca   :  { %v345_v56 = vsel %vm343_vm11, %v520_v13, 128 }
 0xccb   :  { %350 = vmin.xlane.f32.xlu0 %v349_v55  ;;  %v361_v57 = vshra.s32 %v345_v56, 16  ;;  %v360_v62 = vand.u32 65535, %v345_v56 }
 0xccd   :  { %v363_v58 = vcvt.s32.f32 %v361_v57  ;;  %v362_v1 = vcvt.s32.f32 %v360_v62 }
 0xccf   :  { %364 = vmin.xlane.f32.xlu1 %v363_v58 }
 0xd58   :  { %v351_v60 = vpop.xlane.xlu0 %350 }
 0xd59   :  { %vm352_vm12 = vcmp.eq.f32.partialorder %v349_v55, %v351_v60  ;;  %v357_v3 = vcvt.f32.s32 %v351_v60 }
 0xd5a   :  { %v353_v63 = vsel %vm352_vm12, %v348_v61, inf }
 0xd5b   :  { %354 = vmin.xlane.f32.xlu0 %v353_v63  ;;  %v358_v7 = vshll.u32 %v357_v3, 16  ;;  %v89_v63 = vadd.f32 %v540_v45, %v527_v17 }
 0xd5c   :  { %v365_v0 = vpop.xlane.xlu1 %364 }
 0xd5d   :  { %vm366_vm13 = vcmp.eq.f32.partialorder %v363_v58, %v365_v0  ;;  %v371_v8 = vcvt.f32.s32 %v365_v0 }
 0xd5e   :  { %v367_v2 = vsel %vm366_vm13, %v362_v1, inf  ;;  %v131_v1 = vadd.f32 %v550_v9, %v89_v63 }
 0xd5f   :  { %368 = vmin.xlane.f32.xlu1 %v367_v2  ;;  %v372_v21 = vshll.u32 %v371_v8, 16 }
 0xde8   :  { %v355_v4 = vpop.xlane.xlu0 %354 }
 0xde9   :  { %v356_v15 = vcvt.f32.s32 %v355_v4 }
 0xdeb   :  { %v359_v18 = vadd.s32 %v358_v7, %v356_v15 }
 0xdec   :  { %v369_v19 = vpop.xlane.xlu1 %368 }
 0xded   :  { %v370_v22 = vcvt.f32.s32 %v369_v19  ;;  %vm374_vm14 = vcmp.eq.s32.totalorder %v520_v13, %v359_v18 }
 0xdee   :  { %v376_v23 = vsel %vm374_vm14, -inf, %v334_v48 }
 0xdef   :  { %v373_v24 = vadd.s32 %v372_v21, %v370_v22  ;;  %378 = vmax.xlane.f32.xlu0 %v376_v23 }
 0xdf1   :  { %vm375_vm15 = vcmp.eq.s32.totalorder %v520_v13, %v373_v24 }
 0xdf2   :  { %v377_v25 = vsel %vm375_vm15, -inf, %v335_v50 }
 0xdf3   :  { %380 = vmax.xlane.f32.xlu1 %v377_v25 }
 0xe7c   :  { %v379_v26 = vpop.xlane.xlu0 %378 }
 0xe7d   :  { %vm384_vm0 = vcmp.eq.f32.partialorder %v376_v23, %v379_v26 }
 0xe7e   :  { %v386_v27 = vsel %vm384_vm0, %v520_v13, 128 }
 0xe7f   :  { %v389_v28 = vshra.s32 %v386_v27, 16  ;;  %v388_v34 = vand.u32 65535, %v386_v27 }
 0xe80   :  { %v381_v29 = vpop.xlane.xlu1 %380 }
 0xe81   :  { %vm385_vm1 = vcmp.eq.f32.partialorder %v377_v25, %v381_v29  ;;  %v391_v30 = vcvt.s32.f32 %v389_v28  ;;  %v390_v36 = vcvt.s32.f32 %v388_v34 }
 0xe82   :  { %v387_v31 = vsel %vm385_vm1, %v520_v13, 128 }
 0xe83   :  { %392 = vmin.xlane.f32.xlu0 %v391_v30  ;;  %v403_v32 = vshra.s32 %v387_v31, 16  ;;  %v402_v37 = vand.u32 65535, %v387_v31 }
 0xe85   :  { %v405_v33 = vcvt.s32.f32 %v403_v32  ;;  %v404_v44 = vcvt.s32.f32 %v402_v37 }
 0xe87   :  { %406 = vmin.xlane.f32.xlu1 %v405_v33 }
 0xf10   :  { %v393_v35 = vpop.xlane.xlu0 %392 }
 0xf11   :  { %vm394_vm2 = vcmp.eq.f32.partialorder %v391_v30, %v393_v35  ;;  %v399_v48 = vcvt.f32.s32 %v393_v35 }
 0xf12   :  { %v395_v38 = vsel %vm394_vm2, %v390_v36, inf }
 0xf13   :  { %396 = vmin.xlane.f32.xlu0 %v395_v38  ;;  %v400_v50 = vshll.u32 %v399_v48, 16 }
 0xf14   :  { %v407_v40 = vpop.xlane.xlu1 %406 }
 0xf15   :  { %vm408_vm3 = vcmp.eq.f32.partialorder %v405_v33, %v407_v40  ;;  %v413_v52 = vcvt.f32.s32 %v407_v40 }
 0xf16   :  { %v409_v46 = vsel %vm408_vm3, %v404_v44, inf }
 0xf17   :  { %410 = vmin.xlane.f32.xlu1 %v409_v46  ;;  %36 = vadd.xlane.f32.xlu0 %v514_v10  ;;  %v414_v57 = vshll.u32 %v413_v52, 16  ;;  %v88_v10 = vadd.f32 %v536_v42, %v522_v14 }
 0xf1b   :  { %38 = vadd.xlane.f32.xlu1 %v517_v11  ;;  %v130_v11 = vadd.f32 %v546_v6, %v88_v10 }
 0xf1d   :  { %v172_v0 = vadd.f32 %v556_v39, %v130_v11 }
 0xf1f   :  { %v214_v2 = vadd.f32 %v566_v5, %v172_v0 }
 0xf21   :  { %v256_v4 = vadd.f32 %v576_v41, %v214_v2 }
 0xf23   :  { %v298_v42 = vadd.f32 %v586_v16, %v256_v4 }
 0xf25   :  { %v340_v17 = vadd.f32 %v596_v51, %v298_v42 }
 0xf27   :  { %v382_v39 = vadd.f32 %v379_v26, %v340_v17 }
 0xfa0   :  { %v397_v49 = vpop.xlane.xlu0 %396 }
 0xfa1   :  { %v398_v53 = vcvt.f32.s32 %v397_v49 }
 0xfa3   :  { %v401_v55 = vadd.s32 %v400_v50, %v398_v53 }
 0xfa4   :  { %v411_v56 = vpop.xlane.xlu1 %410  ;;  %v37_v62 = vpop.xlane.xlu0 %36 }
 0xfa5   :  { %v412_v58 = vcvt.f32.s32 %v411_v56  ;;  %vm416_vm4 = vcmp.eq.s32.totalorder %v520_v13, %v401_v55  ;;  %457 = vrcp.f32 %v37_v62 }
 0xfa6   :  { %v418_v59 = vsel %vm416_vm4, -inf, %v376_v23 }
 0xfa7   :  { %v415_v60 = vadd.s32 %v414_v57, %v412_v58  ;;  %420 = vmax.xlane.f32.xlu0 %v418_v59 }
 0xfa8   :  { %v39_v3 = vpop.xlane.xlu1 %38 }
 0xfa9   :  { %vm417_vm5 = vcmp.eq.s32.totalorder %v520_v13, %v415_v60  ;;  %v173_v13 = vadd.f32 %v560_v43, %v131_v1  ;;  %459 = vrcp.f32 %v39_v3 }
 0xfaa   :  { %v419_v61 = vsel %vm417_vm5, -inf, %v377_v25 }
 0xfab   :  { %422 = vmax.xlane.f32.xlu1 %v419_v61  ;;  %v215_v14 = vadd.f32 %v570_v12, %v173_v13 }
 0xfad   :  { %v257_v6 = vadd.f32 %v580_v47, %v215_v14 }
 0xfaf   :  { %v299_v45 = vadd.f32 %v590_v20, %v257_v6  ;;  %v458_v9 = vpop.eup %457 }
 0xfb1   :  { %v341_v5 = vadd.f32 %v600_v54, %v299_v45 }
 0xfb3   :  { %v383_v43 = vadd.f32 %v381_v29, %v341_v5  ;;  %v460_v41 = vpop.eup %459 }
0x1034   :  { %v421_v7 = vpop.xlane.xlu0 %420 }
0x1035   :  { %v424_v8 = vadd.f32 %v421_v7, %v382_v39 }
0x1037   :  { %v427_v15 = vmul.f32 %v458_v9, %v424_v8 }
0x1038   :  { %v423_v18 = vpop.xlane.xlu1 %422 }
0x1039   :  { %v430_v19 = vadd.f32 1e-10, %v427_v15  ;;  %v425_v12 = vadd.f32 %v423_v18, %v383_v43 }
0x103b   :  { %461 = vlog2.f32 %v430_v19  ;;  %v429_v16 = vmul.f32 %v460_v41, %v425_v12 }
0x103d   :  { %v431_v21 = vadd.f32 1e-10, %v429_v16 }
0x103f   :  { %463 = vlog2.f32 %v431_v21 }
0x1045   :  { %v462_v47 = vpop.eup %461 }
0x1046   :  { %v433_v51 = vmul.f32 0.6931472, %v462_v47 }
0x1048   :  { %v436_v20 = vmul.f32 %v433_v51, %v427_v15 }
0x1049   :  { %v464_v22 = vpop.eup %463 }
0x104a   :  { %439 = vst.msk [vmem:[%s635_s1] sm:$0xff] %vm438_vm6, %v436_v20  ;;  %v435_v54 = vmul.f32 0.6931472, %v464_v22 }
0x104c   :  { %v437_v23 = vmul.f32 %v435_v54, %v429_v16 }
0x104e   :  { %440 = vst.msk [vmem:[%s635_s1 + $0x8] sm:$0xff] %vm438_vm6, %v437_v23 }
0x104f   :  { %445 = vsyncpa [#allocation3], 1 }

</bundles_post_ra>
